<compile_context>
chip_gen: v7x
topology: tpu7x:2x2x1
jax: 0.10.0
libtpu: 0.0.40
codegen_flags: <defaults>
</compile_context>

<pallas_src>
import functools
import math

import jax
import jax.numpy as jnp
from jax import lax
from jax.experimental import pallas as pl
from jax.experimental.pallas import tpu as pltpu


# -----------------------------------------------------------------------------
# Stage 1: channel mean / max, streamed over C (grid reduction axis).
# -----------------------------------------------------------------------------
def _channel_reduce_kernel(x_ref, o_ref, *, inv_c):
    # x_ref: (TB, TC, THW) input block (lane-dense last dim).
    # o_ref: (2, TB, THW)  [avg; max] planes, resident across the C grid axis.
    c_idx = pl.program_id(2)

    x = x_ref[...].astype(jnp.float32)
    psum = jnp.sum(x, axis=1)           # partial channel sum  (TB, THW)
    pmax = jnp.max(x, axis=1)           # partial channel max  (TB, THW)

    @pl.when(c_idx == 0)
    def _init():
        o_ref[0] = psum
        o_ref[1] = pmax

    @pl.when(c_idx > 0)
    def _accum():
        o_ref[0] = o_ref[0] + psum
        o_ref[1] = jnp.maximum(o_ref[1], pmax)

    @pl.when(c_idx == pl.num_programs(2) - 1)
    def _finalize():
        o_ref[0] = o_ref[0] * inv_c     # running sum -> mean


# -----------------------------------------------------------------------------
# Stage 2: 7x7 conv over [avg; max] + sigmoid (VPU shifted multiply-adds).
# -----------------------------------------------------------------------------
def _conv_sigmoid_kernel(w_ref, p_ref, o_ref, pad_ref, shift_ref, *,
                         ksize, padding, H, W):
    # w_ref:     SMEM (2*K*K,) f32 conv weights, layout c*K*K + ky*K + kx.
    # p_ref:     VMEM (2, TB, H, W)        [avg; max] planes for this block.
    # o_ref:     VMEM (TB, H, W)           sigmoid(conv) output.
    # pad_ref:   VMEM (2, TB, H+2p, W+2p)  zero-padded planes.
    # shift_ref: VMEM (2*K, TB, H+2p, W)   kx-pre-shifted planes.
    K = ksize

    # Zero the padded scratch.  Only the halo border strictly needs it, but the
    # buffer is tiny and a full clear is megacore-safe (a program_id()==0 guard
    # would leave the second TensorCore's private scratch uninitialized).
    pad_ref[...] = jnp.zeros_like(pad_ref)
    pad_ref[0, :, padding:padding + H, padding:padding + W] = (
        p_ref[0].astype(jnp.float32))
    pad_ref[1, :, padding:padding + H, padding:padding + W] = (
        p_ref[1].astype(jnp.float32))

    # Hoist the lane-direction (kx) shifts out of the ky loop: build 2*K
    # pre-shifted planes once; the tap loop below only uses sublane offsets.
    for c in range(2):
        for kx in range(K):
            shift_ref[c * K + kx] = pad_ref[c, :, :, kx:kx + W]

    # 2*K*K-tap cross-correlation (PyTorch Conv2d semantics, bias=None).
    acc = jnp.zeros(o_ref.shape, jnp.float32)
    for c in range(2):
        for kx in range(K):
            base = c * K + kx
            for ky in range(K):
                wt = w_ref[c * K * K + ky * K + kx]
                acc = acc + wt * shift_ref[base, :, ky:ky + H, :]

    o_ref[...] = jax.nn.sigmoid(acc).astype(o_ref.dtype)


# -----------------------------------------------------------------------------
# Tiling heuristics.
# -----------------------------------------------------------------------------
def _choose_batch_block(B, target=8):
    # TB == B (< 8) or TB == 8: both satisfy the (8,128) block-layout rule.
    return B if B < target else target


def _choose_spatial_block(HW, batch_blocks):
    # Split the flattened spatial axis only when there is not enough batch
    # parallelism to feed two TensorCores (v7x megacore).  Keep blocks a
    # multiple of 128 lanes so loads/stores stay unmasked and lane-dense.
    if batch_blocks >= 2 or HW < 256 or HW % 256 != 0:
        return HW
    return HW // 2


def _choose_channel_block(C, TB, THW, itemsize, vmem_budget):
    # Largest channel chunk (a divisor of C that is a multiple of 8, or all of
    # C) whose input block stays within the per-step VMEM budget (blocks are
    # double-buffered by the pipeline).
    max_tc = max(1, vmem_budget // (TB * THW * itemsize))
    if C <= max_tc:
        return C
    tc = (min(C - 1, max_tc) // 8) * 8
    while tc >= 8:
        if C % tc == 0:
            return tc
        tc -= 8
    return C  # no suitable divisor: fall back to the whole channel dim


# -----------------------------------------------------------------------------
# Wrapper.
# -----------------------------------------------------------------------------
def spatial_attention(x, weight, kernel_size=7, *, batch_block=8,
                      vmem_block_budget=4 * 1024 * 1024):
    """x: (B, C, H, W), weight: (1, 2, K, K) -> (B, 1, H, W) attention map."""
    assert kernel_size in (3, 7), "kernel size must be 3 or 7"
    padding = 3 if kernel_size == 7 else 1
    B, C, H, W = x.shape
    K = kernel_size
    HW = H * W

    # ---- tiling decisions ---------------------------------------------------
    TB = _choose_batch_block(B, batch_block)
    Bp = -(-B // TB) * TB                        # pad batch to a multiple of TB
    THW = _choose_spatial_block(HW, Bp // TB)
    TC = _choose_channel_block(C, TB, THW, jnp.dtype(x.dtype).itemsize,
                               vmem_block_budget)

    # Lane-dense view of the input: (B, C, H*W).
    xr = x.reshape(B, C, HW)
    if Bp != B:
        xr = jnp.concatenate(
            [xr, jnp.zeros((Bp - B, C, HW), xr.dtype)], axis=0)

    # ---- stage 1: channel mean / max (streams the dominant HBM read) --------
    planes = pl.pallas_call(
        functools.partial(_channel_reduce_kernel, inv_c=1.0 / C),
        grid=(Bp // TB, HW // THW, C // TC),
        in_specs=[pl.BlockSpec((TB, TC, THW), lambda b, s, c: (b, c, s))],
        out_specs=pl.BlockSpec((2, TB, THW), lambda b, s, c: (0, b, s)),
        out_shape=jax.ShapeDtypeStruct((2, Bp, HW), jnp.float32),
        compiler_params=pltpu.CompilerParams(
            dimension_semantics=("parallel", "parallel", "arbitrary"),
            vmem_limit_bytes=32 * 1024 * 1024),
    )(xr)

    planes = planes.reshape(2, Bp, H, W)   # contiguous reshape in the wrapper

    # ---- stage 2: 7x7 conv + sigmoid (tiny; VPU shifted MACs) ----------------
    # Use a smaller batch block if needed so both v7x TensorCores get work.
    TB2 = TB
    if Bp // TB2 < 2 and TB2 % 2 == 0:
        TB2 //= 2
    Hp, Wp = H + 2 * padding, W + 2 * padding
    w_flat = weight.reshape(-1).astype(jnp.float32)   # (2*K*K,)

    out = pl.pallas_call(
        functools.partial(_conv_sigmoid_kernel, ksize=K, padding=padding,
                          H=H, W=W),
        grid=(Bp // TB2,),
        in_specs=[
            pl.BlockSpec(memory_space=pltpu.SMEM),                  # weights
            pl.BlockSpec((2, TB2, H, W), lambda b: (0, b, 0, 0)),   # planes
        ],
        out_specs=pl.BlockSpec((TB2, H, W), lambda b: (b, 0, 0)),
        out_shape=jax.ShapeDtypeStruct((Bp, H, W), x.dtype),
        scratch_shapes=[
            pltpu.VMEM((2, TB2, Hp, Wp), jnp.float32),      # padded planes
            pltpu.VMEM((2 * K, TB2, Hp, W), jnp.float32),   # kx-shifted planes
        ],
        compiler_params=pltpu.CompilerParams(
            dimension_semantics=("parallel",),
            vmem_limit_bytes=32 * 1024 * 1024),
    )(w_flat, planes)

    return out[:B].reshape(B, 1, H, W)


# -----------------------------------------------------------------------------
# Reference (pure JAX) and self-test.
# -----------------------------------------------------------------------------
def _reference(x, weight, kernel_size=7):
    padding = 3 if kernel_size == 7 else 1
    avg = jnp.mean(x, axis=1, keepdims=True)
    mx = jnp.max(x, axis=1, keepdims=True)
    inp = jnp.concatenate([avg, mx], axis=1)
    y = lax.conv_general_dilated(
        inp, weight, window_strides=(1, 1),
        padding=((padding, padding), (padding, padding)),
        dimension_numbers=("NCHW", "OIHW", "NCHW"))
    return jax.nn.sigmoid(y)


if __name__ == "__main__":
    key = jax.random.PRNGKey(0)
    kx_key, kw_key = jax.random.split(key)

    B, C, H, W = 2, 4, 16, 16
    kernel_size = 7
    x = jax.random.normal(kx_key, (B, C, H, W), dtype=jnp.float32)

    # Deterministic Conv2d(2, 1, 7, bias=False) weight init (PyTorch-style).
    fan_in = 2 * kernel_size * kernel_size
    bound = 1.0 / math.sqrt(fan_in)
    weight = jax.random.uniform(
        kw_key, (1, 2, kernel_size, kernel_size),
        minval=-bound, maxval=bound, dtype=jnp.float32)

    out = spatial_attention(x, weight, kernel_size)
    out = jax.block_until_ready(out)

    ref = _reference(x, weight, kernel_size)
    assert out.shape == (B, 1, H, W)
    assert jnp.allclose(out, ref, atol=1e-5, rtol=1e-5)

    print("KERNEL_OK")
</pallas_src>

<mosaic_0001>
module attributes {stable_mosaic.version = 11 : i64} {
  func.func @_channel_reduce_kernel(%arg0: i32, %arg1: i32, %arg2: i32, %arg3: memref<2x4x128xf32, #tpu.memory_space<vmem>>, %arg4: memref<2x2x128xf32, #tpu.memory_space<vmem>>) attributes {dimension_semantics = [#tpu.dimension_semantics<parallel>, #tpu.dimension_semantics<parallel>, #tpu.dimension_semantics<arbitrary>], iteration_bounds = array<i64: 1, 2, 1>, scalar_prefetch = 0 : i64, scratch_operands = 0 : i64, tpu.core_type = #tpu.core_type<tc>, window_params = [{transform_indices = @transform_0, window_bounds = array<i64: 2, 4, 128>}, {transform_indices = @transform_1, window_bounds = array<i64: 2, 2, 128>}]} {
    %c0 = arith.constant 0 : index
    %c0_0 = arith.constant 0 : index
    %c0_1 = arith.constant 0 : index
    %0 = vector.load %arg3[%c0, %c0_0, %c0_1] : memref<2x4x128xf32, #tpu.memory_space<vmem>>, vector<2x4x128xf32>
    %cst = arith.constant dense<0.000000e+00> : vector<2x128xf32>
    %1 = vector.multi_reduction <add>, %0, %cst [1] : vector<2x4x128xf32> to vector<2x128xf32>
    %cst_2 = arith.constant dense<0xFF800000> : vector<2x128xf32>
    %2 = vector.multi_reduction <maximumf>, %0, %cst_2 [1] : vector<2x4x128xf32> to vector<2x128xf32>
    %c0_i32 = arith.constant 0 : i32
    %3 = arith.cmpi eq, %arg2, %c0_i32 : i32
    %4 = arith.extui %3 : i1 to i32
    %c0_i32_3 = arith.constant 0 : i32
    %5 = arith.cmpi ne, %4, %c0_i32_3 : i32
    scf.if %5 {
      %c0_8 = arith.constant 0 : index
      %c0_9 = arith.constant 0 : index
      %c0_10 = arith.constant 0 : index
      %12 = vector.load %arg4[%c0_8, %c0_9, %c0_10] : memref<2x2x128xf32, #tpu.memory_space<vmem>>, vector<1x2x128xf32>
      %13 = vector.shape_cast %12 : vector<1x2x128xf32> to vector<2x128xf32>
      %14 = vector.shape_cast %1 : vector<2x128xf32> to vector<1x2x128xf32>
      tpu.vector_store %arg4[%c0_8, %c0_9, %c0_10], %14 {strides = array<i32>} : memref<2x2x128xf32, #tpu.memory_space<vmem>>, vector<1x2x128xf32>,
      %c1 = arith.constant 1 : index
      %c0_11 = arith.constant 0 : index
      %c0_12 = arith.constant 0 : index
      %15 = vector.load %arg4[%c1, %c0_11, %c0_12] : memref<2x2x128xf32, #tpu.memory_space<vmem>>, vector<1x2x128xf32>
      %16 = vector.shape_cast %15 : vector<1x2x128xf32> to vector<2x128xf32>
      %17 = vector.shape_cast %2 : vector<2x128xf32> to vector<1x2x128xf32>
      tpu.vector_store %arg4[%c1, %c0_11, %c0_12], %17 {strides = array<i32>} : memref<2x2x128xf32, #tpu.memory_space<vmem>>, vector<1x2x128xf32>,
    } else {
    }
    %c0_i32_4 = arith.constant 0 : i32
    %6 = arith.cmpi sgt, %arg2, %c0_i32_4 : i32
    %7 = arith.extui %6 : i1 to i32
    %c0_i32_5 = arith.constant 0 : i32
    %8 = arith.cmpi ne, %7, %c0_i32_5 : i32
    scf.if %8 {
      %c0_8 = arith.constant 0 : index
      %c0_9 = arith.constant 0 : index
      %c0_10 = arith.constant 0 : index
      %12 = vector.load %arg4[%c0_8, %c0_9, %c0_10] : memref<2x2x128xf32, #tpu.memory_space<vmem>>, vector<1x2x128xf32>
      %13 = vector.shape_cast %12 : vector<1x2x128xf32> to vector<2x128xf32>
      %14 = arith.addf %13, %1 : vector<2x128xf32>
      %c0_11 = arith.constant 0 : index
      %c0_12 = arith.constant 0 : index
      %c0_13 = arith.constant 0 : index
      %15 = vector.load %arg4[%c0_11, %c0_12, %c0_13] : memref<2x2x128xf32, #tpu.memory_space<vmem>>, vector<1x2x128xf32>
      %16 = vector.shape_cast %15 : vector<1x2x128xf32> to vector<2x128xf32>
      %17 = vector.shape_cast %14 : vector<2x128xf32> to vector<1x2x128xf32>
      tpu.vector_store %arg4[%c0_11, %c0_12, %c0_13], %17 {strides = array<i32>} : memref<2x2x128xf32, #tpu.memory_space<vmem>>, vector<1x2x128xf32>,
      %c1 = arith.constant 1 : index
      %c0_14 = arith.constant 0 : index
      %c0_15 = arith.constant 0 : index
      %18 = vector.load %arg4[%c1, %c0_14, %c0_15] : memref<2x2x128xf32, #tpu.memory_space<vmem>>, vector<1x2x128xf32>
      %19 = vector.shape_cast %18 : vector<1x2x128xf32> to vector<2x128xf32>
      %20 = arith.maximumf %19, %2 : vector<2x128xf32>
      %c1_16 = arith.constant 1 : index
      %c0_17 = arith.constant 0 : index
      %c0_18 = arith.constant 0 : index
      %21 = vector.load %arg4[%c1_16, %c0_17, %c0_18] : memref<2x2x128xf32, #tpu.memory_space<vmem>>, vector<1x2x128xf32>
      %22 = vector.shape_cast %21 : vector<1x2x128xf32> to vector<2x128xf32>
      %23 = vector.shape_cast %20 : vector<2x128xf32> to vector<1x2x128xf32>
      tpu.vector_store %arg4[%c1_16, %c0_17, %c0_18], %23 {strides = array<i32>} : memref<2x2x128xf32, #tpu.memory_space<vmem>>, vector<1x2x128xf32>,
    } else {
    }
    %c0_i32_6 = arith.constant 0 : i32
    %9 = arith.cmpi eq, %arg2, %c0_i32_6 : i32
    %10 = arith.extui %9 : i1 to i32
    %c0_i32_7 = arith.constant 0 : i32
    %11 = arith.cmpi ne, %10, %c0_i32_7 : i32
    scf.if %11 {
      %c0_8 = arith.constant 0 : index
      %c0_9 = arith.constant 0 : index
      %c0_10 = arith.constant 0 : index
      %12 = vector.load %arg4[%c0_8, %c0_9, %c0_10] : memref<2x2x128xf32, #tpu.memory_space<vmem>>, vector<1x2x128xf32>
      %13 = vector.shape_cast %12 : vector<1x2x128xf32> to vector<2x128xf32>
      %cst_11 = arith.constant 2.500000e-01 : f32
      %14 = vector.broadcast %cst_11 : f32 to vector<2x128xf32>
      %15 = arith.mulf %13, %14 : vector<2x128xf32>
      %c0_12 = arith.constant 0 : index
      %c0_13 = arith.constant 0 : index
      %c0_14 = arith.constant 0 : index
      %16 = vector.load %arg4[%c0_12, %c0_13, %c0_14] : memref<2x2x128xf32, #tpu.memory_space<vmem>>, vector<1x2x128xf32>
      %17 = vector.shape_cast %16 : vector<1x2x128xf32> to vector<2x128xf32>
      %18 = vector.shape_cast %15 : vector<2x128xf32> to vector<1x2x128xf32>
      tpu.vector_store %arg4[%c0_12, %c0_13, %c0_14], %18 {strides = array<i32>} : memref<2x2x128xf32, #tpu.memory_space<vmem>>, vector<1x2x128xf32>,
    } else {
    }
    return
  }
  func.func @transform_0(%arg0: i32, %arg1: i32, %arg2: i32) -> (i32, i32, i32) {
    %c0_i32 = arith.constant 0 : i32
    return %arg0, %arg2, %arg1 : i32, i32, i32
  }
  func.func @transform_1(%arg0: i32, %arg1: i32, %arg2: i32) -> (i32, i32, i32) {
    %c0_i32 = arith.constant 0 : i32
    %c0_i32_0 = arith.constant 0 : i32
    return %c0_i32, %arg0, %arg1 : i32, i32, i32
  }
}

</mosaic_0001>

<bundles_post_ra>
// kernel: tpu_custom_call.1
= control target key start
LH: loop header
LB: loop body
LE: loop exit
PB: predicated region body
PF: predicated region fallthrough
CT: control target
= control target key end

     0   :  { %6 = vsyncpa [#allocation3], 0  ;;  %s733_s0 = inlined_call_operand.hbm [shape: f32[2,4,256], index: 0, kind: input, shape index: {}]   ;;  %s734_s1 = inlined_call_operand.hbm [shape: f32[2,2,256], index: 1, kind: output, shape index: {}]  }
   0x1   :  { %8 = vsyncpa [#allocation3 + $0x1], 0 }
   0x2   :  { %9 = vsyncpa [#allocation4], 0 }
   0x3   :  { %11 = vsyncpa [#allocation4 + $0x1], 0  ;;  %s559_s6 = smov 0   ;;  %s561_s7 = smov 0  }
   0x4   :  { %s563_s8 = smov 0   ;;  %s565_s9 = smov 0  }
   0x5   :  { %s567_s10 = smov 0   ;;  %s569_s11 = smov 0  }
   0x6 LB: > { %s343_s12 = sadd.s32 4294967295, %s539_s11   ;;  %s344_s13 = sadd.s32 4294967294, %s539_s11   ;;  %s539_s11 = sphi %s569_s11, %s17_s11   ;;  %s535_s10 = sphi %s567_s10, %s748_s10   ;;  %s531_s9 = sphi %s565_s9, %s747_s9   ;;  %s527_s8 = sphi %s563_s8, %s746_s8   ;;  %s523_s7 = sphi %s561_s7, %s745_s7   ;;  %s519_s6 = sphi %s559_s6, %s744_s6  }
   0x7   : > { %s32_s14 = sadd.s32 1, %s535_s10  ;;  %s47_s15 = sadd.s32 1, %s527_s8 }
   0x8   : > { %p34_p0 = scmp.ge.s32.totalorder %s32_s14, 2  ;;  %p54_p1 = scmp.ne.s32.totalorder %s527_s8, %s523_s7 }
   0x9   : > { %p55_p2 = scmp.eq.s32.totalorder %s539_s11, 0  ;;  %p60_p3 = scmp.ne.s32.totalorder %s523_s7, %s519_s6 }
   0xa   : > { %s750_s14 = smov (%p34_p0, %s32_s14), 0  ;;  %p61_p5 = scmp.eq.s32.totalorder %s343_s12, 0 }
   0xb   : > { %p600_p4 = por %p55_p2, %p54_p1  ;;  %s43_s17 = ssub.s32 %s535_s10, %s750_s14 }
   0xc   : > { %p86_p6 = scmp.eq.s32.totalorder %s343_s12, 1  ;;  %p45_p7 = scmp.eq.s32.totalorder %s43_s17, 0 }
   0xd   : > { %p606_p8 = por %p61_p5, %p60_p3  ;;  %p92_p10 = scmp.eq.s32.totalorder %s344_s13, 1 }
   0xe   : > { %p610_p9 = por %p86_p6, %p54_p1  ;;  %p371_p13 = scmp.lt.s32.totalorder %s539_s11, 2 }
   0xf   : > { %s615_s20 = scalar_select %p45_p7, %s527_s8, %s47_s15  }
  0x10   : > { %s738_s19 = scalar_select %p610_p9, 1, 0 }
  0x11   : > { %p617_p11 = por %p92_p10, %p60_p3  ;;  %s112_s22 = sand.u32 1, %s527_s8  }
  0x12   : > { %s347_s23 = sshll.u32 %s112_s22, 3  ;;  %s348_s24 = sshll.u32 %s535_s10, 6 }
  0x13   : > { %s739_s21 = scalar_select %p617_p11, 1, 0 }
  0x14   : > { %s628_s27 = scalar_lea.hbm %s733_s0, %s348_s24  ;;  %s116_s28 = scalar_lea.vmem [#allocation2], %s347_s23 }
  0x15   : > { %s127_s29 = sshll.u32 %s116_s28, 4  ;;  %p634_p0 = pnand %p371_p13, %p600_p4  ;;  %s630_s29 = int_to_ptr.vmem [resolvable:$true] %s127_s29 }
  0x16   : > { %s638_s2 = scalar_lea.sflag [#allocation3], %s112_s22  ;;  %s427_s3 = scalar_lea.hbm %s628_s27, 128 }
  0x17   : > { %p428_p1 = scmp.ne.s32.totalorder %s628_s27, %s427_s3  ;;  %p429_p2 = pneg %p634_p0 }
  0x18   : > { %s432_s12 = scalar_lea.hbm %s733_s0, 256  ;;  %p433_p4 = scmp.lt.u32.totalorder %s628_s27, %s733_s0 }
  0x19   : > { %p430_p3 = pnand %p429_p2, %p428_p1  ;;  %p434_p6 = scmp.lt.u32.totalorder %s432_s12, %s427_s3 }
  0x1a   : > { %p436_p10 = scmp.lt.u32.totalorder %s427_s3, %s628_s27 }
  0x1b   : > { %p431_p5 = pneg %p430_p3  ;;  %p435_p7 = por %p434_p6, %p433_p4 }
  0x1d   : > { %p437_p13 = por %p436_p10, %p435_p7 }
  0x1f   : > { %p438_p12 = pnand %p437_p13, %p431_p5 }
  0x21   : > { %441 = shalt.err (!%p438_p12)
}
  0x22   : > { %s442_s16 = scalar_lea.vmem %s630_s29, 128  ;;  %s541_s17 = smov [#allocation2]  }
  0x23   : > { %p443_p1 = scmp.ne.s32.totalorder %s630_s29, %s442_s16  ;;  %s447_s22 = sshll.u32 %s541_s17, 4  ;;  %s448_s22 = int_to_ptr.vmem [resolvable:$false] %s447_s22 }
  0x24   : > { %s449_s23 = scalar_lea.vmem %s448_s22, 256  ;;  %p450_p9 = scmp.lt.s32.totalorder %s630_s29, %s448_s22 }
  0x25   : > { %p445_p3 = pnand %p443_p1, %p429_p2  ;;  %p451_p4 = scmp.lt.s32.totalorder %s449_s23, %s442_s16 }
  0x27   : > { %p446_p11 = pneg %p445_p3  ;;  %p452_p6 = por %p451_p4, %p450_p9 }
  0x29   : > { %p453_p7 = pnand %p452_p6, %p446_p11 }
  0x2b   : > { %456 = shalt.err (!%p453_p7)
}
  0x2c   : > { %s542_s24 = smov 128   ;;  %s543_s25 = smov 64  }
  0x2d   : > { %s544_s26 = smov 4   ;;  %p349_p12 = scmp.ge.s32.totalorder %s539_s11, 1 }
  0x2e   : > { %366 = dma.hbm_to_vmem [thread:$0]  (!%p634_p0), %s628_s27, 128, %s630_s29, %s638_s2, %s542_s24, %s543_s25, %s544_s26  }
  0x2f   : > { %p135_p2 = scmp.lt.s32.totalorder %s539_s11, 3 }
  0x31   : > { %p136_p5 = pnand %p349_p12, %p135_p2 }
  0x32   : > { %s669_s28 = sand.u32 (!%p136_p5), 1, %s523_s7  }
  0x33   : > { %139 = sbr.rel (%p136_p5) target bundleno = 100 (0x64), region = 24  ;;  %s350_s3 = sshll.u32 (!%p136_p5), %s669_s28, 3 }
  0x34   : > { %s142_s4 = scalar_lea.sflag (!%p136_p5), [#allocation3], %s669_s28  ;;  %s145_s5 = scalar_lea.vmem (!%p136_p5), [#allocation2], %s350_s3 }
  0x3a   : > { %510 = dma.done.wait (%p606_p8), %s142_s4, 128  }
  0x3b   : > { %512 = vsyncadd (%p606_p8), %s142_s4, 4294967168  ;;  %vm167_vm0 = vcmask 1043456   ;;  %v165_v0 = vld [vmem:[%s145_s5] sm:$0xf]  ;;  %v166_v1 = vld [vmem:[%s145_s5 + $0x4] sm:$0xf] }
  0x3c   : > { %v168_v2 = vsel %vm167_vm0, %v165_v0, 0.0  ;;  %v175_v3 = vsel %vm167_vm0, %v166_v1, 0.0  ;;  %v182_v4 = vsel %vm167_vm0, %v165_v0, -inf  ;;  %v189_v5 = vsel %vm167_vm0, %v166_v1, -inf  ;;  %s351_s18 = sshll.u32 %s669_s28, 2  ;;  %s356_s29 = sshll.u32 %s531_s9, 5 }
  0x3d   : > { %v169_v6 = vrot.slane %v168_v2, 4  ;;  %v176_v7 = vrot.slane %v175_v3, 4  ;;  %v183_v8 = vrot.slane %v182_v4, 4  ;;  %v190_v9 = vrot.slane %v189_v5, 4  ;;  %s163_s27 = scalar_lea.vmem [#allocation5], %s351_s18  ;;  %s682_s13 = scalar_lea.hbm %s734_s1, %s356_s29 }
  0x3e   : > { %vm202_vm1 = vcmask 1041409   ;;  %s253_s30 = sshll.u32 %s163_s27, 4  ;;  %s239_s15 = scalar_lea.sflag [#allocation4], %s669_s28  ;;  %s684_s30 = int_to_ptr.vmem [resolvable:$true] %s253_s30 }
  0x3f   : > { %v170_v10 = vadd.f32 %v169_v6, %v168_v2  ;;  %v177_v11 = vadd.f32 %v176_v7, %v175_v3  ;;  %v184_v12 = vmax.f32 %v182_v4, %v183_v8  ;;  %v191_v13 = vmax.f32 %v189_v5, %v190_v9  ;;  %s457_s16 = scalar_lea.vmem %s684_s30, 64  ;;  %p741_p9 = scmp.ne.s32.totalorder %s738_s19, 0 }
  0x40   : > { %p458_p8 = scmp.ne.s32.totalorder %s684_s30, %s457_s16  ;;  %s545_s9 = smov [#allocation5]  }
  0x41   : > { %v171_v14 = vrot.slane %v170_v10, 2  ;;  %v178_v15 = vrot.slane %v177_v11, 2  ;;  %v185_v16 = vrot.slane %v184_v12, 2  ;;  %v192_v17 = vrot.slane %v191_v13, 2  ;;  %s461_s17 = sshll.u32 %s545_s9, 4  ;;  %s462_s17 = int_to_ptr.vmem [resolvable:$false] %s461_s17 }
  0x42   : > { %p459_p11 = pnand %p458_p8, %p741_p9  ;;  %s463_s22 = scalar_lea.vmem %s462_s17, 128 }
  0x43   : > { %v172_v18 = vadd.f32 %v171_v14, %v170_v10  ;;  %v179_v19 = vadd.f32 %v178_v15, %v177_v11  ;;  %v186_v20 = vmax.f32 %v184_v12, %v185_v16  ;;  %v193_v21 = vmax.f32 %v191_v13, %v192_v17  ;;  %p464_p10 = scmp.lt.s32.totalorder %s684_s30, %s462_s17  ;;  %p465_p13 = scmp.lt.s32.totalorder %s463_s22, %s457_s16 }
  0x44   : > { %p460_p0 = pneg %p459_p11 }
  0x45   : > { %v173_v22 = vrot.slane %v172_v18, 1  ;;  %v180_v23 = vrot.slane %v179_v19, 1  ;;  %v187_v24 = vrot.slane %v186_v20, 1  ;;  %v194_v25 = vrot.slane %v193_v21, 1  ;;  %p466_p1 = por %p465_p13, %p464_p10 }
  0x47   : > { %v174_v26 = vadd.f32 %v173_v22, %v172_v18  ;;  %v181_v27 = vadd.f32 %v180_v23, %v179_v19  ;;  %v188_v28 = vmax.f32 %v186_v20, %v187_v24  ;;  %v195_v29 = vmax.f32 %v193_v21, %v194_v25  ;;  %p467_p3 = pnand %p466_p1, %p460_p0 }
  0x49   : > { %v203_v30 = vsel %vm202_vm1, %v181_v27, %v174_v26  ;;  %v208_v31 = vsel %vm202_vm1, %v195_v29, %v188_v28 }
  0x4a   : > { %205 = vst [vmem:[%s163_s27] sm:$0x3] %v203_v30  ;;  %352 = vst [vmem:[%s163_s27 + $0x2] sm:$0x3] %v208_v31 }
  0x51   : > { %v235_v32 = vld [vmem:[%s163_s27] sm:$0x3] }
  0x52   : > { %v236_v33 = vmul.f32 0.25, %v235_v32 }
  0x54   : > { %237 = vst [vmem:[%s163_s27] sm:$0x3] %v236_v33 }
  0x55   : > { %470 = shalt.err (!%p467_p3)
}
  0x56   : > { %s471_s23 = scalar_lea.hbm %s682_s13, 64  ;;  %s475_s26 = scalar_lea.hbm %s734_s1, 128 }
  0x57   : > { %p472_p4 = scmp.ne.s32.totalorder %s682_s13, %s471_s23  ;;  %p476_p12 = scmp.lt.u32.totalorder %s682_s13, %s734_s1 }
  0x58   : > { %p477_p2 = scmp.lt.u32.totalorder %s475_s26, %s471_s23  ;;  %p479_p8 = scmp.lt.u32.totalorder %s471_s23, %s682_s13 }
  0x59   : > { %p473_p6 = pnand %p472_p4, %p741_p9 }
  0x5a   : > { %p478_p5 = por %p477_p2, %p476_p12 }
  0x5b   : > { %p474_p7 = pneg %p473_p6 }
  0x5c   : > { %p480_p11 = por %p479_p8, %p478_p5 }
  0x5e   : > { %p481_p0 = pnand %p480_p11, %p474_p7 }
  0x60   : > { %484 = shalt.err (!%p481_p0)
}
  0x61   : > { %s546_s5 = smov 32   ;;  %s547_s18 = smov 64  }
  0x62   : > { %s548_s27 = smov 2  }
  0x63   : > { %361 = dma.vmem_to_hbm [thread:$0]  (%p741_p9), %s684_s30, 64, %s682_s13, %s239_s15, %s546_s5, %s547_s18, %s548_s27  }
  0x64 PF: > { %s268_s29 = sand.u32 1, %s519_s6   ;;  %p742_p10 = scmp.ne.s32.totalorder %s739_s21, 0 }
  0x65   : > { %p743_p13 = scmp.ge.s32.totalorder %s539_s11, 2  ;;  %s269_s2 = scalar_lea.sflag [#allocation4], %s268_s29 }
  0x67   : > { %p368_p1 = pnand %p743_p13, %p742_p10 }
  0x69   : > { %514 = dma.done.wait (!%p368_p1), %s269_s2, 64  }
  0x6a   : > { %516 = vsyncadd (!%p368_p1), %s269_s2, 4294967232  ;;  %s17_s11 = sadd.s32 1, %s539_s11   ;;  %s744_s6 = smov %s523_s7 }
  0x6b   : > { %p14_p3 = scmp.ge.s32.totalorder %s17_s11, 4   ;;  %s745_s7 = smov %s527_s8 }
  0x6c   : > { %s746_s8 = smov %s615_s20  ;;  %s747_s9 = smov %s535_s10 }
  0x6d   : > { %s748_s10 = smov %s750_s14  ;;  %16 = sbr.rel (!%p14_p3) target bundleno = 6 (0x6), region = 83 }
  0x74   :  { %274 = vsyncpa [#allocation3], 1 }
  0x75   :  { %276 = vsyncpa [#allocation3 + $0x1], 1 }
  0x76   :  { %277 = vsyncpa [#allocation4], 1 }
  0x77   :  { %279 = vsyncpa [#allocation4 + $0x1], 1 }

</bundles_post_ra>
